<compile_context>
chip_gen: v7x
topology: tpu7x:2x2x1
jax: 0.10.0
libtpu: 0.0.40
codegen_flags: <defaults>
</compile_context>

<pallas_src>
import functools
import math

import jax
import jax.numpy as jnp
from jax.experimental import pallas as pl
from jax.experimental.pallas import tpu as pltpu


# ----------------------------------------------------------------------------
# Kernels
# ----------------------------------------------------------------------------
def _add_pe_kernel(x_ref, pe_ref, o_ref):
    # x_ref: (tile_rows, H*d); pe_ref: (1, H*d) VMEM-resident broadcast row.
    o_ref[...] = (x_ref[...] + pe_ref[...]).astype(o_ref.dtype)


def _add_pe_dropout_bits_kernel(x_ref, pe_ref, bits_ref, o_ref, *, threshold, scale):
    # Inverted dropout; mask bits streamed from HBM as uint8 (1 B/elem).
    y = x_ref[...] + pe_ref[...]
    keep = bits_ref[...].astype(jnp.int32) >= threshold    # cheap VPU widen + compare
    o_ref[...] = jnp.where(keep, y * scale, jnp.zeros_like(y)).astype(o_ref.dtype)


def _add_pe_dropout_prng_kernel(seed_ref, x_ref, pe_ref, o_ref, *, threshold_u32, scale):
    # Inverted dropout with the on-chip PRNG: no mask HBM traffic at all.
    pltpu.prng_seed(seed_ref[0] + pl.program_id(0))
    bits = pltpu.bitcast(pltpu.prng_random_bits(x_ref.shape), jnp.uint32)
    keep = bits >= jnp.uint32(threshold_u32)
    y = x_ref[...] + pe_ref[...]
    o_ref[...] = jnp.where(keep, y * scale, jnp.zeros_like(y)).astype(o_ref.dtype)


# ----------------------------------------------------------------------------
# Helpers
# ----------------------------------------------------------------------------
def make_pe(d_model, max_len=20, dtype=jnp.float32):
    """Deterministic sinusoidal table, identical to the PyTorch __init__."""
    position = jnp.arange(max_len, dtype=jnp.float32)[:, None]           # (L, 1)
    div_term = jnp.exp(
        jnp.arange(0, d_model, 2, dtype=jnp.float32) * (-math.log(10000.0) / d_model))
    pe = jnp.zeros((max_len, d_model), dtype=jnp.float32)
    pe = pe.at[:, 0::2].set(jnp.sin(position * div_term))
    pe = pe.at[:, 1::2].set(jnp.cos(position * div_term))
    return pe.astype(dtype)


def _device_tiling_params():
    """(per-block byte budget for the x tile, explicit vmem_limit_bytes or None)."""
    try:
        kind = jax.devices()[0].device_kind.lower()
    except Exception:
        kind = ""
    if "v7" in kind:
        return 5 << 20, 48 << 20     # v7x: 64 MiB VMEM, 3.2 TB/s HBM
    if "v6" in kind:
        return 8 << 20, 64 << 20     # v6e: 128 MiB VMEM, bigger tiles amortize steps
    if "v5" in kind:
        return 2 << 20, None         # v5e: stay under the 16 MiB default scoped VMEM
    return 2 << 20, None             # CPU / interpret / unknown: conservative


def _choose_tile_rows(n_rows, row_bytes, budget_bytes, granule):
    """Row tile that (a) fits the per-block budget, (b) is a multiple of the
    sublane granule (or the full extent for tiny inputs), and (c) leaves at
    least two grid steps for large inputs so both v7x TensorCores get work."""
    if n_rows <= granule or n_rows * row_bytes <= (256 << 10):
        return n_rows                                    # tiny: one full-extent block
    by_budget = max(granule, (budget_bytes // max(row_bytes, 1)) // granule * granule)
    half = -(-((n_rows + 1) // 2) // granule) * granule  # round_up(ceil(n/2), granule)
    return max(granule, min(by_budget, half))


# ----------------------------------------------------------------------------
# Forward
# ----------------------------------------------------------------------------
def time_encoding(x, pe, start_t=0, *, p=0.1, training=False, rng_key=None,
                  use_onchip_prng=False):
    """Pallas implementation of TimeEncoding.forward(x, start_t)."""
    B, H, d = x.shape
    # Glue: slice the pe rows forward() uses, flatten to a lane-dense row.
    pe_slice = jax.lax.dynamic_slice(pe, (start_t, 0), (H, d)).astype(x.dtype)
    HD = H * d
    x2 = x.reshape(B, HD)                       # lane-dense 2D layout
    pe_row = pe_slice.reshape(1, HD)

    use_dropout = training and p > 0.0
    if use_dropout:
        if not (0.0 < p < 1.0):
            raise ValueError("dropout p must be in (0, 1) for training")
        if rng_key is None:
            raise ValueError("training-mode dropout requires an explicit rng_key")

    budget_bytes, vmem_limit = _device_tiling_params()
    itemsize = x2.dtype.itemsize
    # 32-row granule whenever a sub-32-bit array is involved (uint8 mask, bf16 x).
    granule = 32 if (use_dropout or itemsize < 4) else 8
    row_bytes = HD * itemsize
    tile_rows = _choose_tile_rows(B, row_bytes, budget_bytes, granule)
    n_steps = pl.cdiv(B, tile_rows)
    rows_padded = n_steps * tile_rows
    if rows_padded != B:                        # robust to awkward / prime B
        x2 = jnp.pad(x2, ((0, rows_padded - B), (0, 0)))

    row_spec = pl.BlockSpec((tile_rows, HD), lambda i: (i, 0))
    pe_spec = pl.BlockSpec((1, HD), lambda i: (0, 0))   # constant index: stays resident
    params = pltpu.CompilerParams(dimension_semantics=("parallel",),
                                  vmem_limit_bytes=vmem_limit)

    if not use_dropout:
        cost = pl.CostEstimate(flops=rows_padded * HD, transcendentals=0,
                               bytes_accessed=(2 * rows_padded * HD + HD) * itemsize)
        out2 = pl.pallas_call(
            _add_pe_kernel,
            out_shape=jax.ShapeDtypeStruct((rows_padded, HD), x.dtype),
            grid_spec=pltpu.PrefetchScalarGridSpec(
                num_scalar_prefetch=0, grid=(n_steps,),
                in_specs=[row_spec, pe_spec], out_specs=row_spec),
            compiler_params=params, cost_estimate=cost,
        )(x2, pe_row)
    elif use_onchip_prng:
        # Production-TPU path: per-step seeded on-chip PRNG, zero mask HBM traffic.
        # Off by default because the CPU/interpret backend cannot lower prng_*.
        seed = jax.random.randint(rng_key, (1,), 0, jnp.iinfo(jnp.int32).max,
                                  dtype=jnp.int32)
        threshold_u32 = min((1 << 32) - 1, int(round(p * float(1 << 32))))
        kernel = functools.partial(_add_pe_dropout_prng_kernel,
                                   threshold_u32=threshold_u32, scale=1.0 / (1.0 - p))
        row_spec_s = pl.BlockSpec((tile_rows, HD), lambda i, seed_ref: (i, 0))
        pe_spec_s = pl.BlockSpec((1, HD), lambda i, seed_ref: (0, 0))
        cost = pl.CostEstimate(flops=3 * rows_padded * HD, transcendentals=0,
                               bytes_accessed=(2 * rows_padded * HD + HD) * itemsize)
        out2 = pl.pallas_call(
            kernel,
            out_shape=jax.ShapeDtypeStruct((rows_padded, HD), x.dtype),
            grid_spec=pltpu.PrefetchScalarGridSpec(
                num_scalar_prefetch=1, grid=(n_steps,),
                in_specs=[row_spec_s, pe_spec_s], out_specs=row_spec_s),
            compiler_params=params, cost_estimate=cost,
        )(seed, x2, pe_row)
    else:
        # Portable path: uint8 mask bits drawn in the wrapper (1 B/elem extra traffic).
        bits = jax.random.bits(rng_key, (rows_padded, HD), dtype=jnp.uint8)
        threshold = min(255, max(1, int(round(p * 256.0))))   # P(keep) = (256-thr)/256
        kernel = functools.partial(_add_pe_dropout_bits_kernel,
                                   threshold=threshold, scale=1.0 / (1.0 - p))
        cost = pl.CostEstimate(flops=3 * rows_padded * HD, transcendentals=0,
                               bytes_accessed=(2 * rows_padded * HD + HD) * itemsize
                                              + rows_padded * HD)
        out2 = pl.pallas_call(
            kernel,
            out_shape=jax.ShapeDtypeStruct((rows_padded, HD), x.dtype),
            grid_spec=pltpu.PrefetchScalarGridSpec(
                num_scalar_prefetch=0, grid=(n_steps,),
                in_specs=[row_spec, pe_spec, row_spec], out_specs=row_spec),
            compiler_params=params, cost_estimate=cost,
        )(x2, pe_row, bits)

    if rows_padded != B:
        out2 = out2[:B]
    return out2.reshape(B, H, d)


if __name__ == "__main__":
    B, H, D = 2, 8, 32          # (B, H, d) per the module's docstring
    MAX_LEN = 20
    START_T = 3
    P_DROP = 0.1

    key = jax.random.PRNGKey(0)
    kx, kd = jax.random.split(key)
    x = jax.random.normal(kx, (B, H, D), dtype=jnp.float32)
    pe = make_pe(D, max_len=MAX_LEN)

    ref = x + pe[START_T:START_T + H, :][None, :, :]

    # Eval-mode forward (dropout is identity).
    out_eval = jax.block_until_ready(
        time_encoding(x, pe, start_t=START_T, p=P_DROP, training=False))
    assert out_eval.shape == (B, H, D)
    assert jnp.allclose(out_eval, ref, atol=1e-6), "eval-mode mismatch vs reference"

    # Training-mode forward (stochastic inverted dropout applied in the kernel).
    # TODO(synk): dropout mask bits come from jax.random (or the TPU PRNG when
    # use_onchip_prng=True), not torch's RNG stream; keep probability and the
    # 1/(1-p) scaling match nn.Dropout semantics.
    out_train = jax.block_until_ready(
        time_encoding(x, pe, start_t=START_T, p=P_DROP, training=True, rng_key=kd))
    scaled = ref / (1.0 - P_DROP)
    ok = (jnp.abs(out_train) <= 1e-6) | (jnp.abs(out_train - scaled) <= 1e-4)
    assert bool(jnp.all(ok)), "training-mode outputs not in {0, scaled-ref}"
    n_dropped = int(jnp.sum(jnp.abs(out_train) <= 1e-6))
    assert 0 < n_dropped < out_train.size, "dropout mask degenerate"

    print("KERNEL_OK")
</pallas_src>

<mosaic_0001>
module attributes {stable_mosaic.version = 11 : i64} {
  func.func @_add_pe_kernel(%arg0: i32, %arg1: memref<2x256xf32, #tpu.memory_space<vmem>>, %arg2: memref<1x256xf32, #tpu.memory_space<vmem>>, %arg3: memref<2x256xf32, #tpu.memory_space<vmem>>) attributes {dimension_semantics = [#tpu.dimension_semantics<parallel>], iteration_bounds = array<i64: 1>, scalar_prefetch = 0 : i64, scratch_operands = 0 : i64, tpu.core_type = #tpu.core_type<tc>, window_params = [{transform_indices = @transform_0, window_bounds = array<i64: 2, 256>}, {pipeline_mode = #tpu.pipeline_mode<synchronous>, transform_indices = @transform_1, window_bounds = array<i64: 1, 256>}, {transform_indices = @transform_2, window_bounds = array<i64: 2, 256>}]} {
    %c0 = arith.constant 0 : index
    %c0_0 = arith.constant 0 : index
    %0 = vector.load %arg1[%c0, %c0_0] : memref<2x256xf32, #tpu.memory_space<vmem>>, vector<2x256xf32>
    %c0_1 = arith.constant 0 : index
    %c0_2 = arith.constant 0 : index
    %1 = vector.load %arg2[%c0_1, %c0_2] : memref<1x256xf32, #tpu.memory_space<vmem>>, vector<1x256xf32>
    %2 = vector.broadcast %1 : vector<1x256xf32> to vector<2x256xf32>
    %3 = arith.addf %0, %2 : vector<2x256xf32>
    %c0_3 = arith.constant 0 : index
    %c0_4 = arith.constant 0 : index
    %4 = vector.load %arg3[%c0_3, %c0_4] : memref<2x256xf32, #tpu.memory_space<vmem>>, vector<2x256xf32>
    tpu.vector_store %arg3[%c0_3, %c0_4], %3 {strides = array<i32>} : memref<2x256xf32, #tpu.memory_space<vmem>>, vector<2x256xf32>,
    return
  }
  func.func @transform_0(%arg0: i32) -> (i32, i32) {
    %c0_i32 = arith.constant 0 : i32
    %c0_i32_0 = arith.constant 0 : i32
    return %arg0, %c0_i32 : i32, i32
  }
  func.func @transform_1(%arg0: i32) -> (i32, i32) {
    %c0_i32 = arith.constant 0 : i32
    %c0_i32_0 = arith.constant 0 : i32
    %c0_i32_1 = arith.constant 0 : i32
    return %c0_i32, %c0_i32_0 : i32, i32
  }
  func.func @transform_2(%arg0: i32) -> (i32, i32) {
    %c0_i32 = arith.constant 0 : i32
    %c0_i32_0 = arith.constant 0 : i32
    return %arg0, %c0_i32 : i32, i32
  }
}

</mosaic_0001>

<bundles_post_ra>
// kernel: tpu_custom_call.1
= control target key start
LH: loop header
LB: loop body
LE: loop exit
PB: predicated region body
PF: predicated region fallthrough
CT: control target
= control target key end

     0   :  { %7 = vsyncpa [#allocation3], 0  ;;  %s157_s0 = inlined_call_operand.hbm [shape: f32[2,256], index: 0, kind: input, shape index: {}]   ;;  %s158_s1 = inlined_call_operand.vmem [shape: f32[1,256], index: 1, kind: input, shape index: {}]   ;;  %s159_s2 = inlined_call_operand.hbm [shape: f32[2,256], index: 2, kind: output, shape index: {}]  }
   0x1   :  { %8 = vsyncpa [#allocation4], 0  ;;  %s112_s9 = smov [#allocation2]   ;;  %s64_s13 = scalar_lea.hbm %s157_s0, 64 }
   0x2   :  { %s15_s10 = sshll.u32 %s112_s9, 4  ;;  %p65_p0 = scmp.ne.s32.totalorder %s157_s0, %s64_s13  ;;  %s16_s10 = int_to_ptr.vmem [resolvable:$true] %s15_s10 }
   0x3   :  { %p68_p1 = scmp.lt.u32.totalorder %s64_s13, %s157_s0 }
   0x5   :  { %p70_p2 = pnand %p68_p1, %p65_p0 }
   0x7   :  { %73 = shalt.err (!%p70_p2)
}
   0x8   :  { %s74_s18 = scalar_lea.vmem %s16_s10, 64  ;;  %p79_p4 = scmp.lt.s32.totalorder %s16_s10, %s16_s10 }
   0x9   :  { %p75_p3 = scmp.ne.s32.totalorder %s16_s10, %s74_s18  ;;  %p80_p5 = scmp.lt.s32.totalorder %s74_s18, %s74_s18 }
   0xb   :  { %p81_p6 = por %p80_p5, %p79_p4 }
   0xd   :  { %p82_p7 = pnand %p81_p6, %p75_p3 }
   0xf   :  { %85 = shalt.err (!%p82_p7)
}
  0x10   :  { %18 = dma.hbm_to_vmem [thread:$0]  %s157_s0, 64, %s16_s10, [#allocation3]  }
  0x11   :  { %108 = dma.done.wait [#allocation3], 64  }
  0x12   :  { %109 = vsyncadd [#allocation3], 4294967232  ;;  %v27_v0 = vlaneseq  ;;  %v113_v1 = vmov 1983009808   ;;  %v25_v7 = vld [vmem:[%s158_s1] sm:$0x3] }
  0x13   :  { %v37_v2 = vunpack.c.l.s4 %v113_v1  ;;  %v24_v12 = vld [vmem:[#allocation2] sm:$0xf]  ;;  %s114_s23 = smov [#allocation5]  }
  0x14   :  { %v28_v3 = vshrl.u32 %v27_v0, 7  ;;  %s52_s0 = sshll.u32 %s114_s23, 4  ;;  %s53_s0 = int_to_ptr.vmem [resolvable:$true] %s52_s0 }
  0x15   :  { %v38_v6 = vunpack.c.0.s8 %v37_v2  ;;  %s86_s24 = scalar_lea.vmem %s53_s0, 64  ;;  %p91_p9 = scmp.lt.s32.totalorder %s53_s0, %s53_s0 }
  0x16   :  { %v29_v4 = vsub.s32 0, %v28_v3  ;;  %v33_v5 = vsub.s32 1, %v28_v3  ;;  %p87_p8 = scmp.ne.s32.totalorder %s53_s0, %s86_s24  ;;  %p92_p10 = scmp.lt.s32.totalorder %s86_s24, %s86_s24 }
  0x17   :  { %v41_v10 = vsub.s32 %v38_v6, %v28_v3 }
  0x18   :  { %v30_v8 = vrot.slane %v25_v7, %v29_v4  ;;  %v34_v9 = vrot.slane %v25_v7, %v33_v5  ;;  %p93_p11 = por %p92_p10, %p91_p9 }
  0x1a   :  { %v35_v11 = vcombine.low %v30_v8, %v34_v9  ;;  %p94_p12 = pnand %p93_p11, %p87_p8 }
  0x1c   :  { %v42_v13 = vrot.slane %v35_v11, %v41_v10 }
  0x1e   :  { %v44_v14 = vadd.f32 %v42_v13, %v24_v12 }
  0x20   :  { %45 = vst [vmem:[#allocation5] sm:$0xf] %v44_v14 }
  0x21   :  { %97 = shalt.err (!%p94_p12)
}
  0x22   :  { %s98_s26 = scalar_lea.hbm %s159_s2, 64 }
  0x23   :  { %p99_p13 = scmp.ne.s32.totalorder %s159_s2, %s98_s26  ;;  %p102_p0 = scmp.lt.u32.totalorder %s98_s26, %s159_s2 }
  0x25   :  { %p104_p1 = pnand %p102_p0, %p99_p13 }
  0x27   :  { %107 = shalt.err (!%p104_p1)
}
  0x28   :  { %55 = dma.vmem_to_hbm [thread:$0]  %s53_s0, 64, %s159_s2, [#allocation4]  }
  0x29   :  { %110 = dma.done.wait [#allocation4], 64  }
  0x2a   :  { %111 = vsyncadd [#allocation4], 4294967232 }
  0x2b   :  { %59 = vsyncpa [#allocation3], 1 }
  0x2c   :  { %60 = vsyncpa [#allocation4], 1 }

</bundles_post_ra>
